<compile_context>
chip_gen: v7x
topology: tpu7x:2x2x1
jax: 0.10.0
libtpu: 0.0.40
codegen_flags: <defaults>
</compile_context>

<pallas_src>
import math

import jax
import jax.numpy as jnp
from jax.experimental import pallas as pl
from jax.experimental.pallas import tpu as pltpu


def _mca_kernel(x1_ref, x2_ref, o_ref):
    # Blocks are (Bb, S, D), fully resident in VMEM.
    x1 = x1_ref[...]
    x2 = x2_ref[...]
    d = x1.shape[-1]
    scale = jnp.float32(1.0 / math.sqrt(d))

    # Fold 1/sqrt(d) into the x1 QK operand, keeping the MXU operand in the
    # native input dtype.
    x1s = (x1.astype(jnp.float32) * scale).astype(x1.dtype)

    # Single scaled score matrix: s[b, i, j] = <x1[b, i], x2[b, j]> / sqrt(d).
    # (x2 @ x1^T is simply its per-batch transpose; never recomputed.)
    s = jnp.einsum("bid,bjd->bij", x1s, x2,
                   preferred_element_type=jnp.float32)            # (Bb, S, S) f32

    # --- direction A: softmax over j (keys = rows of x2), then @ x2 --------
    m_a = jnp.max(s, axis=-1, keepdims=True)
    e_a = jnp.exp(s - m_a)
    p_a = e_a * pl.reciprocal(jnp.sum(e_a, axis=-1, keepdims=True), approx=True)
    out_a = jnp.einsum("bij,bjd->bid", p_a.astype(x2.dtype), x2,
                       preferred_element_type=jnp.float32)        # (Bb, S, D)

    # --- direction B: scores_B = s^T; softmax over i (keys = rows of x1) ---
    # qprob[b, i, j] = p_b[b, j, i] (column softmax of s), hence
    # out_b[b, j, :] = sum_i qprob[b, i, j] * x1[b, i, :].
    m_b = jnp.max(s, axis=-2, keepdims=True)
    e_b = jnp.exp(s - m_b)
    qprob = e_b * pl.reciprocal(jnp.sum(e_b, axis=-2, keepdims=True), approx=True)
    out_b = jnp.einsum("bij,bid->bjd", qprob.astype(x1.dtype), x1,
                       preferred_element_type=jnp.float32)        # (Bb, S, D)

    o_ref[...] = (out_a + out_b).astype(o_ref.dtype)


def mutual_cross_attention(x1, x2, *, vmem_block_budget_bytes=20 * 1024 * 1024):
    """Pallas TPU implementation of MutualCrossAttention (dropout = identity).

    Args:
      x1: (B, S, D) array.
      x2: (B, S, D) array (same shape/dtype as x1).
    Returns:
      (B, S, D) array, same dtype as x1.
    """
    assert x1.shape == x2.shape, "x1 and x2 must have identical shapes"
    B, S, D = x1.shape
    itemsize = jnp.dtype(x1.dtype).itemsize

    # Rough per-batch-element VMEM footprint of one grid step:
    #   - x1/x2/out blocks (pipeline double-buffered): ~6 * S*D*itemsize
    #   - f32 intermediates: score + exp/prob buffers (~3*S*S) and scaled-x1
    #     + out_a/out_b accumulators (~3*S*D).
    per_elem = 6 * S * D * itemsize + 4 * (3 * S * S + 3 * S * D)
    bb = max(1, min(B, vmem_block_budget_bytes // max(per_elem, 1)))
    while B % bb:
        bb -= 1

    # Block last-two dims equal the full array dims, so the (8,128) tiling
    # constraint does not apply.
    spec = pl.BlockSpec((bb, S, D), lambda i: (i, 0, 0))

    return pl.pallas_call(
        _mca_kernel,
        out_shape=jax.ShapeDtypeStruct((B, S, D), x1.dtype),
        grid_spec=pltpu.PrefetchScalarGridSpec(
            num_scalar_prefetch=0,
            grid=(B // bb,),
            in_specs=[spec, spec],
            out_specs=spec,
        ),
        compiler_params=pltpu.CompilerParams(
            dimension_semantics=("parallel",),
            vmem_limit_bytes=48 * 1024 * 1024,
        ),
    )(x1, x2)


def _reference(x1, x2):
    d = x1.shape[-1]
    s_a = jnp.einsum("bqd,bkd->bqk", x1, x2) / math.sqrt(d)
    a = jnp.einsum("bqk,bkd->bqd", jax.nn.softmax(s_a, axis=-1), x2)
    s_b = jnp.einsum("bqd,bkd->bqk", x2, x1) / math.sqrt(d)
    b = jnp.einsum("bqk,bkd->bqd", jax.nn.softmax(s_b, axis=-1), x1)
    return a + b


if __name__ == "__main__":
    key = jax.random.PRNGKey(0)
    k1, k2 = jax.random.split(key)

    B, S, D = 2, 8, 32
    x1 = jax.random.normal(k1, (B, S, D), dtype=jnp.float32)
    x2 = jax.random.normal(k2, (B, S, D), dtype=jnp.float32)

    out = jax.block_until_ready(mutual_cross_attention(x1, x2))

    ref = _reference(x1, x2)
    assert out.shape == (B, S, D)
    # Tolerance loosened slightly vs the exact-f32 path: approx reciprocal on
    # the EUP (~1e-3-level relative error in probabilities) + folded scale.
    assert jnp.allclose(out, ref, atol=5e-3, rtol=5e-3), "mismatch vs reference"

    print("KERNEL_OK")
</pallas_src>

<mosaic_0001>
module attributes {stable_mosaic.version = 11 : i64} {
  func.func @_mca_kernel(%arg0: i32, %arg1: memref<2x8x32xf32, #tpu.memory_space<vmem>>, %arg2: memref<2x8x32xf32, #tpu.memory_space<vmem>>, %arg3: memref<2x8x32xf32, #tpu.memory_space<vmem>>) attributes {dimension_semantics = [#tpu.dimension_semantics<parallel>], iteration_bounds = array<i64: 1>, scalar_prefetch = 0 : i64, scratch_operands = 0 : i64, tpu.core_type = #tpu.core_type<tc>, window_params = [{transform_indices = @transform_0, window_bounds = array<i64: 2, 8, 32>}, {transform_indices = @transform_1, window_bounds = array<i64: 2, 8, 32>}, {transform_indices = @transform_2, window_bounds = array<i64: 2, 8, 32>}]} {
    %c0 = arith.constant 0 : index
    %c0_0 = arith.constant 0 : index
    %c0_1 = arith.constant 0 : index
    %0 = vector.load %arg1[%c0, %c0_0, %c0_1] : memref<2x8x32xf32, #tpu.memory_space<vmem>>, vector<2x8x32xf32>
    %c0_2 = arith.constant 0 : index
    %c0_3 = arith.constant 0 : index
    %c0_4 = arith.constant 0 : index
    %1 = vector.load %arg2[%c0_2, %c0_3, %c0_4] : memref<2x8x32xf32, #tpu.memory_space<vmem>>, vector<2x8x32xf32>
    %cst = arith.constant 0.176776692 : f32
    %2 = vector.broadcast %cst : f32 to vector<2x8x32xf32>
    %3 = arith.mulf %0, %2 : vector<2x8x32xf32>
    "tpu.trace_start"() <{level = 10 : i32, message = "bid,bjd->bij"}> : () -> ()
    %cst_5 = arith.constant dense<0.000000e+00> : vector<2x8x8xf32>
    %4 = tpu.matmul %3, %1, %cst_5 {dimension_numbers = #tpu.dot_dimension_numbers<[2], [2], [1], [1], [0, 0, 0, 1, 1, 1], [0], [0]>} : vector<2x8x32xf32>, vector<2x8x32xf32>, vector<2x8x8xf32> -> vector<2x8x8xf32>
    "tpu.trace_stop"() : () -> ()
    %cst_6 = arith.constant dense<0xFF800000> : vector<2x8xf32>
    %5 = vector.multi_reduction <maximumf>, %4, %cst_6 [2] : vector<2x8x8xf32> to vector<2x8xf32>
    %6 = vector.shape_cast %5 : vector<2x8xf32> to vector<2x8x1xf32>
    %7 = vector.broadcast %6 : vector<2x8x1xf32> to vector<2x8x8xf32>
    %8 = arith.subf %4, %7 : vector<2x8x8xf32>
    %9 = math.exp %8 : vector<2x8x8xf32>
    %cst_7 = arith.constant dense<0.000000e+00> : vector<2x8xf32>
    %10 = vector.multi_reduction <add>, %9, %cst_7 [2] : vector<2x8x8xf32> to vector<2x8xf32>
    %11 = vector.shape_cast %10 : vector<2x8xf32> to vector<2x8x1xf32>
    %12 = tpu.reciprocal %11 {approx = true} : vector<2x8x1xf32> -> vector<2x8x1xf32>
    %13 = vector.broadcast %12 : vector<2x8x1xf32> to vector<2x8x8xf32>
    %14 = arith.mulf %9, %13 : vector<2x8x8xf32>
    "tpu.trace_start"() <{level = 10 : i32, message = "bij,bjd->bid"}> : () -> ()
    %cst_8 = arith.constant dense<0.000000e+00> : vector<2x8x32xf32>
    %15 = tpu.matmul %14, %1, %cst_8 {dimension_numbers = #tpu.dot_dimension_numbers<[2], [1], [1], [2], [0, 0, 0, 1, 1, 2], [0], [0]>} : vector<2x8x8xf32>, vector<2x8x32xf32>, vector<2x8x32xf32> -> vector<2x8x32xf32>
    "tpu.trace_stop"() : () -> ()
    %cst_9 = arith.constant dense<0xFF800000> : vector<2x8xf32>
    %16 = vector.multi_reduction <maximumf>, %4, %cst_9 [1] : vector<2x8x8xf32> to vector<2x8xf32>
    %17 = vector.shape_cast %16 : vector<2x8xf32> to vector<2x1x8xf32>
    %18 = vector.broadcast %17 : vector<2x1x8xf32> to vector<2x8x8xf32>
    %19 = arith.subf %4, %18 : vector<2x8x8xf32>
    %20 = math.exp %19 : vector<2x8x8xf32>
    %cst_10 = arith.constant dense<0.000000e+00> : vector<2x8xf32>
    %21 = vector.multi_reduction <add>, %20, %cst_10 [1] : vector<2x8x8xf32> to vector<2x8xf32>
    %22 = vector.shape_cast %21 : vector<2x8xf32> to vector<2x1x8xf32>
    %23 = tpu.reciprocal %22 {approx = true} : vector<2x1x8xf32> -> vector<2x1x8xf32>
    %24 = vector.broadcast %23 : vector<2x1x8xf32> to vector<2x8x8xf32>
    %25 = arith.mulf %20, %24 : vector<2x8x8xf32>
    "tpu.trace_start"() <{level = 10 : i32, message = "bij,bid->bjd"}> : () -> ()
    %cst_11 = arith.constant dense<0.000000e+00> : vector<2x8x32xf32>
    %26 = tpu.matmul %25, %0, %cst_11 {dimension_numbers = #tpu.dot_dimension_numbers<[1], [1], [2], [2], [0, 0, 0, 2, 1, 2], [0], [0]>} : vector<2x8x8xf32>, vector<2x8x32xf32>, vector<2x8x32xf32> -> vector<2x8x32xf32>
    "tpu.trace_stop"() : () -> ()
    %27 = arith.addf %15, %26 : vector<2x8x32xf32>
    %c0_12 = arith.constant 0 : index
    %c0_13 = arith.constant 0 : index
    %c0_14 = arith.constant 0 : index
    %28 = vector.load %arg3[%c0_12, %c0_13, %c0_14] : memref<2x8x32xf32, #tpu.memory_space<vmem>>, vector<2x8x32xf32>
    tpu.vector_store %arg3[%c0_12, %c0_13, %c0_14], %27 {strides = array<i32>} : memref<2x8x32xf32, #tpu.memory_space<vmem>>, vector<2x8x32xf32>,
    return
  }
  func.func @transform_0(%arg0: i32) -> (i32, i32, i32) {
    %c0_i32 = arith.constant 0 : i32
    %c0_i32_0 = arith.constant 0 : i32
    %c0_i32_1 = arith.constant 0 : i32
    return %arg0, %c0_i32, %c0_i32_0 : i32, i32, i32
  }
  func.func @transform_1(%arg0: i32) -> (i32, i32, i32) {
    %c0_i32 = arith.constant 0 : i32
    %c0_i32_0 = arith.constant 0 : i32
    %c0_i32_1 = arith.constant 0 : i32
    return %arg0, %c0_i32, %c0_i32_0 : i32, i32, i32
  }
  func.func @transform_2(%arg0: i32) -> (i32, i32, i32) {
    %c0_i32 = arith.constant 0 : i32
    %c0_i32_0 = arith.constant 0 : i32
    %c0_i32_1 = arith.constant 0 : i32
    return %arg0, %c0_i32, %c0_i32_0 : i32, i32, i32
  }
}

</mosaic_0001>

<bundles_post_ra>
// kernel: tpu_custom_call.1
= control target key start
LH: loop header
LB: loop body
LE: loop exit
PB: predicated region body
PF: predicated region fallthrough
CT: control target
= control target key end

     0   :  { %7 = vsyncpa [#allocation3], 0  ;;  %s892_s0 = inlined_call_operand.hbm [shape: f32[2,8,32], index: 0, kind: input, shape index: {}]   ;;  %s893_s1 = inlined_call_operand.hbm [shape: f32[2,8,32], index: 1, kind: input, shape index: {}]   ;;  %s894_s2 = inlined_call_operand.hbm [shape: f32[2,8,32], index: 2, kind: output, shape index: {}]  }
   0x1   :  { %8 = vsyncpa [#allocation6], 0 }
   0x2   :  { %9 = vsyncpa [#allocation4], 0  ;;  %s783_s9 = smov [#allocation2]   ;;  %s711_s13 = scalar_lea.hbm %s892_s0, 256 }
   0x3   :  { %s15_s10 = sshll.u32 %s783_s9, 4  ;;  %p712_p0 = scmp.ne.s32.totalorder %s892_s0, %s711_s13  ;;  %s16_s10 = int_to_ptr.vmem [resolvable:$true] %s15_s10 }
   0x4   :  { %p715_p1 = scmp.lt.u32.totalorder %s711_s13, %s892_s0 }
   0x6   :  { %p717_p2 = pnand %p715_p1, %p712_p0 }
   0x8   :  { %720 = shalt.err (!%p717_p2)
}
   0x9   :  { %s721_s18 = scalar_lea.vmem %s16_s10, 256  ;;  %p726_p4 = scmp.lt.s32.totalorder %s16_s10, %s16_s10 }
   0xa   :  { %p722_p3 = scmp.ne.s32.totalorder %s16_s10, %s721_s18  ;;  %p727_p5 = scmp.lt.s32.totalorder %s721_s18, %s721_s18 }
   0xc   :  { %p728_p6 = por %p727_p5, %p726_p4 }
   0xe   :  { %p729_p7 = pnand %p728_p6, %p722_p3 }
  0x10   :  { %732 = shalt.err (!%p729_p7)
}
  0x11   :  { %s784_s19 = smov 128   ;;  %s785_s20 = smov 8  }
  0x12   :  { %21 = dma.hbm_to_vmem [thread:$0]  %s892_s0, 256, %s16_s10, [#allocation3], %s784_s19, %s784_s19, %s785_s20  }
  0x13   :  { %s786_s23 = smov [#allocation5]   ;;  %s733_s27 = scalar_lea.hbm %s893_s1, 256 }
  0x14   :  { %s27_s24 = sshll.u32 %s786_s23, 4  ;;  %p734_p8 = scmp.ne.s32.totalorder %s893_s1, %s733_s27  ;;  %s28_s24 = int_to_ptr.vmem [resolvable:$true] %s27_s24 }
  0x15   :  { %p737_p9 = scmp.lt.u32.totalorder %s733_s27, %s893_s1 }
  0x17   :  { %p739_p10 = pnand %p737_p9, %p734_p8 }
  0x19   :  { %742 = shalt.err (!%p739_p10)
}
  0x1a   :  { %s743_s4 = scalar_lea.vmem %s28_s24, 256  ;;  %p748_p12 = scmp.lt.s32.totalorder %s28_s24, %s28_s24 }
  0x1b   :  { %p744_p11 = scmp.ne.s32.totalorder %s28_s24, %s743_s4  ;;  %p749_p13 = scmp.lt.s32.totalorder %s743_s4, %s743_s4 }
  0x1d   :  { %p750_p0 = por %p749_p13, %p748_p12 }
  0x1f   :  { %p751_p1 = pnand %p750_p0, %p744_p11 }
  0x21   :  { %754 = shalt.err (!%p751_p1)
}
  0x22   :  { %33 = dma.hbm_to_vmem [thread:$0]  %s893_s1, 256, %s28_s24, [#allocation6], %s784_s19, %s784_s19, %s785_s20  }
  0x23   :  { %777 = dma.done.wait [#allocation3], 256  }
  0x24   :  { %778 = vsyncadd [#allocation3], 4294967040 }
  0x25   :  { %779 = dma.done.wait [#allocation6], 256  }
  0x26   :  { %780 = vsyncadd [#allocation6], 4294967040  ;;  %v787_v0 = vmov 0.0   ;;  %vm788_vm0 = vmmov 0   ;;  %vm46_vm1 = vcmask 261120   ;;  %v841_v1 = vld [vmem:[#allocation5] sm:$0xff] }
  0x27   :  { %654 = vmatprep.subr.mxu0 %v787_v0  ;;  %659 = vmatprep.subr.mxu1 %v787_v0  ;;  %v843_v2 = vld [vmem:[#allocation5 + $0x8] sm:$0xff]  ;;  %v40_v3 = vld [vmem:[#allocation2] sm:$0xff]  ;;  %v41_v5 = vld [vmem:[#allocation2 + $0x8] sm:$0xff]  ;;  %vm199_vm2 = vcmask 64512   ;;  %s789_s1 = smov [#allocation7]  }
  0x28   :  { %656 = vmatprep.mubr.msk.f32.mxu0 %vm788_vm0, %v787_v0  ;;  %661 = vmatprep.mubr.msk.f32.mxu1 %vm788_vm0, %v787_v0  ;;  %v44_v4 = vmul.f32 0.17677669, %v40_v3  ;;  %v45_v6 = vmul.f32 0.17677669, %v41_v5  ;;  %s621_s6 = sshll.u32 %s789_s1, 4  ;;  %s622_s6 = int_to_ptr.vmem [resolvable:$true] %s621_s6 }
  0x29   :  { %655 = vmatpush3.xpose.msk.msra.mxu0 %vm46_vm1, %v841_v1  ;;  %660 = vmatpush3.xpose.msk.msra.mxu1 %vm46_vm1, %v843_v2  ;;  %s755_s7 = scalar_lea.vmem %s622_s6, 256  ;;  %p760_p3 = scmp.lt.s32.totalorder %s622_s6, %s622_s6 }
  0x2a   :  { %664 = vmatprep.subr.mxu0 %v787_v0  ;;  %669 = vmatprep.subr.mxu1 %v787_v0  ;;  %p756_p2 = scmp.ne.s32.totalorder %s622_s6, %s755_s7  ;;  %p761_p4 = scmp.lt.s32.totalorder %s755_s7, %s755_s7 }
  0x2c   :  { %657 = vmatmul.mubr.msk.f32.vlgmr.msra.gmra.mrb[0].mxu0 %vm46_vm1, %v44_v4  ;;  %662 = vmatmul.mubr.msk.f32.vlgmr.msra.gmra.mrb[0].mxu1 %vm46_vm1, %v45_v6  ;;  %p762_p5 = por %p761_p4, %p760_p3 }
  0x2d   :  { %665 = vmatpush3.msra.mxu0 %v40_v3  ;;  %666 = vmatprep.mubr.msk.f32.mxu0 %vm788_vm0, %v787_v0 }
  0x2e   :  { %674 = vmatprep.subr.mxu0 %v787_v0  ;;  %670 = vmatpush3.msra.mxu1 %v41_v5  ;;  %p763_p6 = pnand %p762_p5, %p756_p2 }
  0x2f   :  { %671 = vmatprep.mubr.msk.f32.mxu1 %vm788_vm0, %v787_v0  ;;  %679 = vmatprep.subr.mxu1 %v787_v0 }
  0xff   :  { %v119_v7 = vpop.f32.mrb[0].mxu0  ;;  %v195_v8 = vpop.f32.mrb[0].mxu1 }
 0x100   :  { %v658_v9 = vpop.f32.mrb[1].mxu0  ;;  %v200_v10 = vsel %vm199_vm2, %v119_v7, -inf  ;;  %v663_v11 = vpop.f32.mrb[1].mxu1  ;;  %v203_v12 = vsel %vm199_vm2, %v195_v8, -inf }
 0x101   :  { %201 = vmax.xlane.f32.xlu0 %v200_v10  ;;  %v222_v13 = vrot.slane %v200_v10, 4  ;;  %v228_v14 = vrot.slane %v203_v12, 4 }
 0x103   :  { %v223_v15 = vmax.f32 %v200_v10, %v222_v13  ;;  %v229_v16 = vmax.f32 %v203_v12, %v228_v14 }
 0x105   :  { %v224_v17 = vrot.slane %v223_v15, 2  ;;  %v230_v18 = vrot.slane %v229_v16, 2  ;;  %204 = vmax.xlane.f32.xlu0 %v203_v12 }
 0x107   :  { %v225_v19 = vmax.f32 %v223_v15, %v224_v17  ;;  %v231_v20 = vmax.f32 %v229_v16, %v230_v18 }
 0x109   :  { %v226_v21 = vrot.slane %v225_v19, 1  ;;  %v232_v22 = vrot.slane %v231_v20, 1 }
 0x10b   :  { %v227_v23 = vmax.f32 %v225_v19, %v226_v21  ;;  %v233_v24 = vmax.f32 %v231_v20, %v232_v22 }
 0x10d   :  { %v234_v25 = vsub.f32 %v119_v7, %v227_v23  ;;  %v235_v26 = vsub.f32 %v195_v8, %v233_v24 }
 0x10f   :  { %v236_v27 = vmul.f32 1.442695, %v234_v25  ;;  %v238_v44 = vmul.f32 1.442695, %v235_v26 }
 0x111   :  { %695 = vpow2.f32 %v236_v27 }
 0x11b   :  { %v696_v28 = vpop.eup %695 }
 0x11c   :  { %v240_v29 = vsel %vm199_vm2, %v696_v28, 0.0 }
 0x11d   :  { %v241_v30 = vrot.slane %v240_v29, 4 }
 0x11f   :  { %v242_v31 = vadd.f32 %v241_v30, %v240_v29 }
 0x121   :  { %v243_v32 = vrot.slane %v242_v31, 2 }
 0x123   :  { %v244_v33 = vadd.f32 %v243_v32, %v242_v31 }
 0x125   :  { %v245_v34 = vrot.slane %v244_v33, 1 }
 0x127   :  { %v246_v35 = vadd.f32 %v245_v34, %v244_v33 }
 0x129   :  { %697 = vrcp.f32 %v246_v35 }
 0x133   :  { %v698_v36 = vpop.eup %697 }
 0x134   :  { %v256_v37 = vmul.f32 %v698_v36, %v696_v28 }
 0x136   :  { %258 = vxpose.xlu0.b32.start.end [1/1] (short) (narrow) %v256_v37, 8 }
 0x18e   :  { %v202_v38 = vpop.xlane.xlu0 %201 }
 0x18f   :  { %v206_v39 = vsub.f32 %v119_v7, %v202_v38 }
 0x191   :  { %v208_v40 = vmul.f32 1.442695, %v206_v39 }
 0x192   :  { %v205_v41 = vpop.xlane.xlu0 %204 }
 0x193   :  { %699 = vpow2.f32 %v208_v40  ;;  %v207_v42 = vsub.f32 %v195_v8, %v205_v41 }
 0x195   :  { %v210_v43 = vmul.f32 1.442695, %v207_v42 }
 0x197   :  { %701 = vpow2.f32 %v210_v43 }
 0x198   :  { %703 = vpow2.f32 %v238_v44 }
 0x19d   :  { %v700_v45 = vpop.eup %699 }
 0x19e   :  { %v212_v46 = vsel %vm199_vm2, %v700_v45, 0.0 }
 0x19f   :  { %213 = vadd.xlane.f32.xlu1 %v212_v46 }
 0x1a1   :  { %v702_v47 = vpop.eup %701 }
 0x1a2   :  { %v215_v48 = vsel %vm199_vm2, %v702_v47, 0.0  ;;  %v704_v49 = vpop.eup %703 }
 0x1a3   :  { %216 = vadd.xlane.f32.xlu1 %v215_v48  ;;  %v247_v50 = vsel %vm199_vm2, %v704_v49, 0.0 }
 0x1a4   :  { %v248_v51 = vrot.slane %v247_v50, 4 }
 0x1a6   :  { %v249_v52 = vadd.f32 %v248_v51, %v247_v50 }
 0x1a8   :  { %v250_v54 = vrot.slane %v249_v52, 2 }
 0x1aa   :  { %v251_v55 = vadd.f32 %v250_v54, %v249_v52 }
 0x1ac   :  { %v252_v56 = vrot.slane %v251_v55, 1 }
 0x1ae   :  { %v253_v57 = vadd.f32 %v252_v56, %v251_v55 }
 0x1b0   :  { %705 = vrcp.f32 %v253_v57 }
 0x1b6   :  { %v274_v53 = vpop.trf.xlu0 }
 0x1b7   :  { %667 = vmatmul.mubr.msk.f32.vlgmr.msra.gmra.mrb[2].mxu0 %vm199_vm2, %v274_v53 }
 0x1b8   :  { %675 = vmatpush3.msra.mxu0 %v841_v1  ;;  %676 = vmatprep.mubr.msk.f32.mxu0 %vm788_vm0, %v787_v0 }
 0x1ba   :  { %v706_v58 = vpop.eup %705 }
 0x1bb   :  { %v257_v59 = vmul.f32 %v706_v58, %v704_v49 }
 0x1d6   :  { %363 = vxpose.xlu1.b32.start.end [1/1] (short) (narrow) %v257_v59, 8 }
 0x22c   :  { %v214_v60 = vpop.xlane.xlu1 %213 }
 0x22d   :  { %707 = vrcp.f32 %v214_v60 }
 0x230   :  { %v217_v63 = vpop.xlane.xlu1 %216 }
 0x231   :  { %709 = vrcp.f32 %v217_v63 }
 0x237   :  { %v708_v61 = vpop.eup %707 }
 0x238   :  { %v220_v62 = vmul.f32 %v708_v61, %v700_v45 }
 0x23a   :  { %677 = vmatmul.mubr.msk.f32.vlgmr.msra.gmra.mrb[2].mxu0 %vm199_vm2, %v220_v62 }
 0x23b   :  { %v710_v1 = vpop.eup %709 }
 0x23c   :  { %v221_v4 = vmul.f32 %v710_v1, %v702_v47 }
 0x256   :  { %v379_v3 = vpop.trf.xlu1 }
 0x257   :  { %672 = vmatmul.mubr.msk.f32.vlgmr.msra.gmra.mrb[2].mxu1 %vm199_vm2, %v379_v3 }
 0x258   :  { %680 = vmatpush3.msra.mxu1 %v843_v2  ;;  %681 = vmatprep.mubr.msk.f32.mxu1 %vm788_vm0, %v787_v0 }
 0x25f   :  { %682 = vmatmul.mubr.msk.f32.vlgmr.msra.gmra.mrb[2].mxu1 %vm199_vm2, %v221_v4 }
 0x30d   :  { %v537_v5 = vpop.f32.mrb[2].mxu0 }
 0x30e   :  { %614 = vst.msk [vmem:[#allocation7] sm:$0xff] %vm46_vm1, %v537_v5  ;;  %v678_v6 = vpop.f32.mrb[3].mxu0 }
 0x332   :  { %v610_v7 = vpop.f32.mrb[2].mxu1 }
 0x333   :  { %615 = vst.msk [vmem:[#allocation7 + $0x8] sm:$0xff] %vm46_vm1, %v610_v7  ;;  %v683_v8 = vpop.f32.mrb[3].mxu1 }
 0x334   :  { %766 = shalt.err (!%p763_p6)
}
 0x335   :  { %s767_s10 = scalar_lea.hbm %s894_s2, 256 }
 0x336   :  { %p768_p7 = scmp.ne.s32.totalorder %s894_s2, %s767_s10  ;;  %p771_p8 = scmp.lt.u32.totalorder %s767_s10, %s894_s2 }
 0x338   :  { %p773_p9 = pnand %p771_p8, %p768_p7 }
 0x33a   :  { %776 = shalt.err (!%p773_p9)
}
 0x33b   :  { %627 = dma.vmem_to_hbm [thread:$0]  %s622_s6, 256, %s894_s2, [#allocation4], %s784_s19, %s784_s19, %s785_s20  }
 0x33c   :  { %781 = dma.done.wait [#allocation4], 256  }
 0x33d   :  { %782 = vsyncadd [#allocation4], 4294967040 }
 0x33e   :  { %631 = vsyncpa [#allocation3], 1 }
 0x33f   :  { %632 = vsyncpa [#allocation6], 1 }
 0x340   :  { %633 = vsyncpa [#allocation4], 1 }

</bundles_post_ra>
